<compile_context>
chip_gen: v6e
topology: v6e:2x2x1
jax: 0.10.0
libtpu: 0.0.40
codegen_flags: <defaults>
</compile_context>

<pallas_src>
import jax
import jax.numpy as jnp
from jax.experimental import pallas as pl
from jax.experimental.pallas import tpu as pltpu


def _beta_mean_kernel(c_ref, x_ref, o_ref):
    """c_ref: SMEM (3,) f32 = [c1, d = c1 - c0, -c2]; x_ref/o_ref: (rows, LANES) VMEM tiles."""
    c1 = c_ref[0]
    d = c_ref[1]
    neg_c2 = c_ref[2]
    x = x_ref[...]
    # c0 + (c1 - c0) * (1 - exp(-c2 x))  ==  c1 - (c1 - c0) * exp(-c2 x)
    mean = c1 - d * jnp.exp(neg_c2 * x)
    o_ref[...] = jnp.clip(mean, 0.001, 1.0 - 0.001)


def _transform_theta(theta: jax.Array) -> tuple[jax.Array, jax.Array, jax.Array]:
    """Matches MonotonicBetaRegressor._transform_theta (F.sigmoid / F.elu, alpha=1)."""
    theta0, theta1, theta2 = theta[0], theta[1], theta[2]
    elu = lambda v: jnp.where(v > 0, v, jnp.expm1(v))
    c0 = jax.nn.sigmoid(theta0)
    c1 = jax.nn.sigmoid(theta0 + (elu(theta1) + 1.0))
    c2 = elu(theta2) + 1.0
    return c0, c1, c2


def _fold_params(theta: jax.Array) -> jax.Array:
    """Pre-fold scalar algebra for the kernel: [c1, c1 - c0, -c2]."""
    c0, c1, c2 = _transform_theta(theta)
    return jnp.stack([c1, c1 - c0, -c2]).astype(jnp.float32)


def _round_up(a: int, b: int) -> int:
    return ((a + b - 1) // b) * b


def monotonic_beta_forward(
    theta: jax.Array,
    x: jax.Array,
    *,
    lanes: int = 512,
    block_rows: int = 1024,
) -> jax.Array:
    """Forward pass of MonotonicBetaRegressor.

    x: any shape of f32 inputs (PyTorch uses (N, 1)); output has the same shape.
    """
    assert lanes % 128 == 0 and block_rows % 8 == 0
    orig_shape = x.shape
    x = x.astype(jnp.float32)
    n = x.size

    c = _fold_params(theta)  # (3,) f32 -> lives in SMEM inside the kernel

    # Lane-dense slab: flatten, pad up to a whole number of (block_rows x lanes)
    # tiles (or a single 8-row-aligned tile when the data is small), reshape.
    rows = max(1, -(-n // lanes))                     # cdiv(n, lanes)
    br = min(block_rows, _round_up(rows, 8))          # adaptive tile height, mult of 8
    padded_rows = _round_up(rows, br)
    padded_n = padded_rows * lanes

    flat = jnp.pad(x.reshape(-1), (0, padded_n - n))  # zero-pad tail (discarded later)
    slab = flat.reshape(padded_rows, lanes)

    grid = (padded_rows // br,)
    out_slab = pl.pallas_call(
        _beta_mean_kernel,
        out_shape=jax.ShapeDtypeStruct((padded_rows, lanes), jnp.float32),
        grid=grid,
        in_specs=[
            pl.BlockSpec(memory_space=pltpu.MemorySpace.SMEM),   # folded params
            pl.BlockSpec((br, lanes), lambda i: (i, 0)),         # X tile (lane-dense)
        ],
        out_specs=pl.BlockSpec((br, lanes), lambda i: (i, 0)),
        compiler_params=pltpu.CompilerParams(
            dimension_semantics=("parallel",),                   # shards across v7x's 2 TCs
        ),
    )(c, slab)

    return out_slab.reshape(-1)[:n].reshape(orig_shape)


def _reference_forward(theta: jax.Array, x: jax.Array) -> jax.Array:
    c0, c1, c2 = _transform_theta(theta)
    mean = c0 + (c1 - c0) * (1.0 - jnp.exp(-c2 * x))
    return jnp.clip(mean, 0.001, 1.0 - 0.001)


if __name__ == "__main__":
    key = jax.random.PRNGKey(0)
    k_theta, k_x = jax.random.split(key)

    # Deterministic "randn(3)" parameter init (matches torch.nn.Parameter(torch.randn(3)) shape).
    theta = jax.random.normal(k_theta, (3,), dtype=jnp.float32)

    # Batch of 1-d inputs, (N, 1) like the PyTorch regressor's tensor_X.
    # N deliberately NOT a multiple of the lane width / tile size to exercise padding.
    n = 6000
    x = jax.random.uniform(k_x, (n, 1), dtype=jnp.float32, minval=0.0, maxval=3.0)

    out = monotonic_beta_forward(theta, x)
    out = jax.block_until_ready(out)

    ref = _reference_forward(theta, x)
    assert out.shape == (n, 1) and out.dtype == jnp.float32
    assert jnp.allclose(out, ref, atol=1e-6, rtol=1e-6), "mismatch vs. reference"

    print("KERNEL_OK")
</pallas_src>

<mosaic_0001>
module attributes {stable_mosaic.version = 11 : i64} {
  func.func @_beta_mean_kernel(%arg0: i32, %arg1: memref<3xf32, #tpu.memory_space<smem>>, %arg2: memref<16x512xf32, #tpu.memory_space<vmem>>, %arg3: memref<16x512xf32, #tpu.memory_space<vmem>>) attributes {dimension_semantics = [#tpu.dimension_semantics<parallel>], iteration_bounds = array<i64: 1>, scalar_prefetch = 0 : i64, scratch_operands = 0 : i64, tpu.core_type = #tpu.core_type<tc>, window_params = [{transform_indices = @transform_0, window_bounds = array<i64: 3>}, {transform_indices = @transform_1, window_bounds = array<i64: 16, 512>}, {transform_indices = @transform_2, window_bounds = array<i64: 16, 512>}]} {
    %c0 = arith.constant 0 : index
    %0 = memref.load %arg1[%c0] : memref<3xf32, #tpu.memory_space<smem>>
    %c1 = arith.constant 1 : index
    %1 = memref.load %arg1[%c1] : memref<3xf32, #tpu.memory_space<smem>>
    %c2 = arith.constant 2 : index
    %2 = memref.load %arg1[%c2] : memref<3xf32, #tpu.memory_space<smem>>
    %c0_0 = arith.constant 0 : index
    %c0_1 = arith.constant 0 : index
    %3 = vector.load %arg2[%c0_0, %c0_1] : memref<16x512xf32, #tpu.memory_space<vmem>>, vector<16x512xf32>
    %4 = vector.broadcast %2 : f32 to vector<16x512xf32>
    %5 = arith.mulf %4, %3 : vector<16x512xf32>
    %6 = math.exp %5 : vector<16x512xf32>
    %7 = vector.broadcast %1 : f32 to vector<16x512xf32>
    %8 = arith.mulf %7, %6 : vector<16x512xf32>
    %9 = vector.broadcast %0 : f32 to vector<16x512xf32>
    %10 = arith.subf %9, %8 : vector<16x512xf32>
    %cst = arith.constant 1.000000e-03 : f32
    %cst_2 = arith.constant 9.990000e-01 : f32
    %11 = vector.broadcast %cst : f32 to vector<16x512xf32>
    %12 = arith.maximumf %11, %10 : vector<16x512xf32>
    %13 = vector.broadcast %cst_2 : f32 to vector<16x512xf32>
    %14 = arith.minimumf %13, %12 : vector<16x512xf32>
    %c0_3 = arith.constant 0 : index
    %c0_4 = arith.constant 0 : index
    %15 = vector.load %arg3[%c0_3, %c0_4] : memref<16x512xf32, #tpu.memory_space<vmem>>, vector<16x512xf32>
    tpu.vector_store %arg3[%c0_3, %c0_4], %14 {strides = array<i32>} : memref<16x512xf32, #tpu.memory_space<vmem>>, vector<16x512xf32>,
    return
  }
  func.func @transform_0(%arg0: i32) -> i32 {
    %c0_i32 = arith.constant 0 : i32
    %c0_i32_0 = arith.constant 0 : i32
    return %c0_i32 : i32
  }
  func.func @transform_1(%arg0: i32) -> (i32, i32) {
    %c0_i32 = arith.constant 0 : i32
    %c0_i32_0 = arith.constant 0 : i32
    return %arg0, %c0_i32 : i32, i32
  }
  func.func @transform_2(%arg0: i32) -> (i32, i32) {
    %c0_i32 = arith.constant 0 : i32
    %c0_i32_0 = arith.constant 0 : i32
    return %arg0, %c0_i32 : i32, i32
  }
}

</mosaic_0001>

<bundles_post_ra>
// kernel: tpu_custom_call.1
= control target key start
LH: loop header
LB: loop body
LE: loop exit
PB: predicated region body
PF: predicated region fallthrough
CT: control target
= control target key end

     0   :  { %7 = vsyncpa [#allocation5], 0  ;;  %s245_s0 = inlined_call_operand.hbm [shape: f32[3], index: 0, kind: input, shape index: {}]   ;;  %s246_s1 = inlined_call_operand.hbm [shape: f32[16,512], index: 1, kind: input, shape index: {}]   ;;  %s247_s2 = inlined_call_operand.hbm [shape: f32[16,512], index: 2, kind: output, shape index: {}]  }
   0x1   :  { %8 = vsyncpa [#allocation3], 0 }
   0x2   :  { %9 = vsyncpa [#allocation4], 0  ;;  %s210_s9 = smov [#allocation2]   ;;  %s211_s12 = smov [#allocation6]  }
   0x3   :  { %17 = dma.hbm_to_smem %s245_s0, 16, %s210_s9, [#allocation5]  }
   0x4   :  { %s23_s13 = sshll.u32 %s211_s12, 4  ;;  %s24_s13 = int_to_ptr.vmem [resolvable:$true] %s23_s13 }
   0x5   :  { %s172_s14 = scalar_lea.vmem %s24_s13, 1024  ;;  %p177_p1 = scmp.lt.s32.totalorder %s24_s13, %s24_s13 }
   0x6   :  { %p173_p0 = scmp.ne.s32.totalorder %s24_s13, %s172_s14  ;;  %p178_p2 = scmp.lt.s32.totalorder %s172_s14, %s172_s14 }
   0x8   :  { %p179_p3 = por %p178_p2, %p177_p1 }
   0xa   :  { %p180_p4 = pnand %p179_p3, %p173_p0 }
   0xc   :  { %183 = shalt.err (!%p180_p4)
}
   0xd   :  { %s212_s15 = smov 512   ;;  %s213_s16 = smov 32  }
   0xe   :  { %29 = dma.hbm_to_vmem [thread:$0]  %s246_s1, 1024, %s24_s13, [#allocation3], %s212_s15, %s212_s15, %s213_s16  }
   0xf   :  { %204 = dma.done.wait [#allocation5], 16  }
  0x10   :  { %205 = vsyncadd [#allocation5], 4294967280 }
  0x11   :  { %206 = dma.done.wait [#allocation3], 1024  }
  0x12   :  { %207 = vsyncadd [#allocation3], 4294966272 }
  0x13   :  { %36 = sfence }
  0x14   :  { %s134_s0 = sld [smem:[#allocation2 + $0x2]]  ;;  %v40_v0 = vld [vmem:[#allocation6] sm:$0xff]  ;;  %v41_v1 = vld [vmem:[#allocation6 + $0x8] sm:$0xff]  ;;  %v42_v2 = vld [vmem:[#allocation6 + $0x10] sm:$0xff]  ;;  %s214_s20 = smov [#allocation7]  }
  0x15   :  { %v43_v3 = vld [vmem:[#allocation6 + $0x18] sm:$0xff]  ;;  %v44_v4 = vld [vmem:[#allocation6 + $0x20] sm:$0xff]  ;;  %v45_v5 = vld [vmem:[#allocation6 + $0x28] sm:$0xff]  ;;  %s133_s1 = sld [smem:[#allocation2 + $0x1]]  ;;  %s120_s21 = sshll.u32 %s214_s20, 4  ;;  %s121_s21 = int_to_ptr.vmem [resolvable:$true] %s120_s21 }
  0x16   :  { %v46_v7 = vld [vmem:[#allocation6 + $0x30] sm:$0xff]  ;;  %v47_v12 = vld [vmem:[#allocation6 + $0x38] sm:$0xff]  ;;  %s37_s19 = sld [smem:[#allocation2]]  ;;  %s184_s22 = scalar_lea.vmem %s121_s21, 1024 }
  0x17   :  { %p185_p5 = scmp.ne.s32.totalorder %s121_s21, %s184_s22  ;;  %p189_p6 = scmp.lt.s32.totalorder %s121_s21, %s121_s21 }
  0x18   :  { %p190_p7 = scmp.lt.s32.totalorder %s184_s22, %s184_s22 }
  0x1a   :  { %v48_v6 = vstv %s134_s0  ;;  %p191_p8 = por %p190_p7, %p189_p6 }
  0x1b   :  { %v49_v8 = vmul.f32 %v48_v6, %v40_v0  ;;  %v50_v9 = vmul.f32 %v48_v6, %v41_v1  ;;  %v51_v10 = vmul.f32 %v48_v6, %v42_v2  ;;  %v52_v11 = vmul.f32 %v48_v6, %v43_v3 }
  0x1c   :  { %v53_v13 = vmul.f32 %v48_v6, %v44_v4  ;;  %v54_v14 = vmul.f32 %v48_v6, %v45_v5  ;;  %v55_v18 = vmul.f32 %v48_v6, %v46_v7  ;;  %v56_v20 = vmul.f32 %v48_v6, %v47_v12  ;;  %p192_p9 = pnand %p191_p8, %p185_p5 }
  0x1d   :  { %v57_v15 = vmul.f32 1.442695, %v49_v8  ;;  %v59_v16 = vmul.f32 1.442695, %v50_v9  ;;  %v61_v17 = vmul.f32 1.442695, %v51_v10  ;;  %v73_v25 = vstv %s133_s1 }
  0x1e   :  { %v63_v19 = vmul.f32 1.442695, %v52_v11  ;;  %v65_v21 = vmul.f32 1.442695, %v53_v13  ;;  %v67_v22 = vmul.f32 1.442695, %v54_v14  ;;  %v82_v27 = vstv %s37_s19 }
  0x1f   :  { %140 = vpow2.f32 %v57_v15  ;;  %v69_v23 = vmul.f32 1.442695, %v55_v18  ;;  %v71_v24 = vmul.f32 1.442695, %v56_v20 }
  0x20   :  { %142 = vpow2.f32 %v59_v16 }
  0x21   :  { %144 = vpow2.f32 %v61_v17 }
  0x22   :  { %146 = vpow2.f32 %v63_v19 }
  0x23   :  { %148 = vpow2.f32 %v65_v21 }
  0x24   :  { %150 = vpow2.f32 %v67_v22 }
  0x25   :  { %152 = vpow2.f32 %v69_v23 }
  0x26   :  { %154 = vpow2.f32 %v71_v24 }
  0x2c   :  { %v141_v26 = vpop.eup %140 }
  0x2d   :  { %v143_v28 = vpop.eup %142  ;;  %v74_v29 = vmul.f32 %v141_v26, %v73_v25 }
  0x2e   :  { %v145_v30 = vpop.eup %144  ;;  %v75_v31 = vmul.f32 %v143_v28, %v73_v25 }
  0x2f   :  { %v147_v32 = vpop.eup %146  ;;  %v83_v33 = vsub.f32 %v82_v27, %v74_v29  ;;  %v76_v34 = vmul.f32 %v145_v30, %v73_v25 }
  0x30   :  { %v149_v35 = vpop.eup %148  ;;  %v84_v36 = vsub.f32 %v82_v27, %v75_v31  ;;  %v77_v37 = vmul.f32 %v147_v32, %v73_v25 }
  0x31   :  { %v151_v38 = vpop.eup %150  ;;  %v91_v39 = vmax.f32 %v83_v33, 0.001  ;;  %v85_v40 = vsub.f32 %v82_v27, %v76_v34  ;;  %v78_v41 = vmul.f32 %v149_v35, %v73_v25 }
  0x32   :  { %v153_v42 = vpop.eup %152  ;;  %v92_v43 = vmax.f32 %v84_v36, 0.001  ;;  %v86_v44 = vsub.f32 %v82_v27, %v77_v37  ;;  %v79_v45 = vmul.f32 %v151_v38, %v73_v25 }
  0x33   :  { %v155_v46 = vpop.eup %154  ;;  %v99_v47 = vmin.f32 %v91_v39, 0.999  ;;  %v93_v48 = vmax.f32 %v85_v40, 0.001  ;;  %v87_v49 = vsub.f32 %v82_v27, %v78_v41  ;;  %v80_v50 = vmul.f32 %v153_v42, %v73_v25 }
  0x34   :  { %v100_v51 = vmin.f32 %v92_v43, 0.999  ;;  %v94_v52 = vmax.f32 %v86_v44, 0.001  ;;  %v88_v53 = vsub.f32 %v82_v27, %v79_v45  ;;  %v81_v54 = vmul.f32 %v155_v46, %v73_v25 }
  0x35   :  { %107 = vst [vmem:[#allocation7] sm:$0xff] %v99_v47  ;;  %v101_v55 = vmin.f32 %v93_v48, 0.999  ;;  %v95_v56 = vmax.f32 %v87_v49, 0.001  ;;  %v89_v57 = vsub.f32 %v82_v27, %v80_v50 }
  0x36   :  { %108 = vst [vmem:[#allocation7 + $0x8] sm:$0xff] %v100_v51  ;;  %v102_v58 = vmin.f32 %v94_v52, 0.999  ;;  %v96_v59 = vmax.f32 %v88_v53, 0.001  ;;  %v90_v60 = vsub.f32 %v82_v27, %v81_v54 }
  0x37   :  { %109 = vst [vmem:[#allocation7 + $0x10] sm:$0xff] %v101_v55  ;;  %v103_v61 = vmin.f32 %v95_v56, 0.999  ;;  %v97_v62 = vmax.f32 %v89_v57, 0.001 }
  0x38   :  { %110 = vst [vmem:[#allocation7 + $0x18] sm:$0xff] %v102_v58  ;;  %v104_v63 = vmin.f32 %v96_v59, 0.999  ;;  %v98_v0 = vmax.f32 %v90_v60, 0.001 }
  0x39   :  { %111 = vst [vmem:[#allocation7 + $0x20] sm:$0xff] %v103_v61  ;;  %v105_v1 = vmin.f32 %v97_v62, 0.999 }
  0x3a   :  { %112 = vst [vmem:[#allocation7 + $0x28] sm:$0xff] %v104_v63  ;;  %v106_v2 = vmin.f32 %v98_v0, 0.999 }
  0x3b   :  { %113 = vst [vmem:[#allocation7 + $0x30] sm:$0xff] %v105_v1 }
  0x3c   :  { %114 = vst [vmem:[#allocation7 + $0x38] sm:$0xff] %v106_v2 }
  0x3d   :  { %195 = shalt.err (!%p192_p9)
}
  0x3e   :  { %126 = dma.vmem_to_hbm [thread:$0]  %s121_s21, 1024, %s247_s2, [#allocation4], %s212_s15, %s212_s15, %s213_s16  }
  0x3f   :  { %208 = dma.done.wait [#allocation4], 1024  }
  0x40   :  { %209 = vsyncadd [#allocation4], 4294966272 }
  0x41   :  { %130 = vsyncpa [#allocation3], 1 }
  0x42   :  { %131 = vsyncpa [#allocation4], 1 }
  0x43   :  { %132 = vsyncpa [#allocation5], 1 }

</bundles_post_ra>
